<compile_context>
chip_gen: v6e
topology: v6e:2x2x1
jax: 0.10.0
libtpu: 0.0.40
codegen_flags: <defaults>
</compile_context>

<pallas_src>
import functools

import jax
import jax.numpy as jnp
from jax.experimental import pallas as pl
from jax.experimental.pallas import tpu as pltpu

NUM_ITERS = 6
EPS = 0.1
GAMMA = 0.1


def _round_up(v, m):
    return (v + m - 1) // m * m


# ---------------------------------------------------------------------------
# Shared per-row-tile update:
#   x_new = x + eps * tanh([A@X | X] @ [Wg^T ; Wa^T] + b)
# ---------------------------------------------------------------------------
def _update_row_tile(agg_f32, xi_f32, xi_bf16, wcat_ref, b_ref, z_ref):
    c_pad = xi_f32.shape[-1]
    # Stage the two halves into a preallocated bf16 scratch (no concatenate
    # temporary) and issue ONE K = 2*c_pad MXU dot with f32 accumulation.
    z_ref[:, :c_pad] = agg_f32.astype(jnp.bfloat16)
    z_ref[:, c_pad:] = xi_bf16
    h = jnp.dot(z_ref[...], wcat_ref[...],
                preferred_element_type=jnp.float32) + b_ref[...]
    return xi_f32 + EPS * jnp.tanh(h)          # state update stays f32


def _seed_state(x0_hbm, x_f32, x_bf16, seed_sem, n_pad):
    """One-time DMA of x0 (HBM) into the f32 state + build its bf16 copy."""
    cp = pltpu.make_async_copy(x0_hbm, x_f32, seed_sem)
    cp.start()
    cp.wait()
    x_bf16[pl.ds(0, n_pad), :] = x_f32[...].astype(jnp.bfloat16)


# ---------------------------------------------------------------------------
# Resident-A kernel: grid = (iteration t, row-tile i); A lives in VMEM.
# ---------------------------------------------------------------------------
def _kernel_resident(x0_hbm, a_ref, wcat_ref, b_ref, o_ref,
                     x_f32, x_bf16, z_ref, seed_sem, *, n_pad, tile):
    t = pl.program_id(0)
    i = pl.program_id(1)
    read_off = (t % 2) * n_pad           # half of x_bf16 holding X_t
    write_off = n_pad - read_off         # half receiving X_{t+1}
    row = i * tile

    @pl.when((t == 0) & (i == 0))
    def _():
        _seed_state(x0_hbm, x_f32, x_bf16, seed_sem, n_pad)

    # agg = A[row-tile, :] @ X_t  -- bf16 MXU operands, f32 acc, K = n_pad.
    agg = jnp.dot(
        a_ref[pl.ds(pl.multiple_of(row, 128), tile), :],
        x_bf16[pl.ds(pl.multiple_of(read_off, 128), n_pad), :],
        preferred_element_type=jnp.float32)

    xi_f32 = x_f32[pl.ds(pl.multiple_of(row, 128), tile), :]
    xi_bf16 = x_bf16[pl.ds(pl.multiple_of(read_off + row, 128), tile), :]
    x_new = _update_row_tile(agg, xi_f32, xi_bf16, wcat_ref, b_ref, z_ref)

    x_f32[pl.ds(pl.multiple_of(row, 128), tile), :] = x_new
    x_bf16[pl.ds(pl.multiple_of(write_off + row, 128), tile), :] = (
        x_new.astype(jnp.bfloat16))

    @pl.when(t == NUM_ITERS - 1)
    def _():
        o_ref[pl.ds(pl.multiple_of(row, 128), tile), :] = x_new


# ---------------------------------------------------------------------------
# Streamed-A fallback kernel: grid = (t, row-tile i, reduction-tile k);
# A tiles are double-buffered from HBM via BlockSpec.
# ---------------------------------------------------------------------------
def _kernel_streamed(x0_hbm, a_ref, wcat_ref, b_ref, o_ref,
                     x_f32, x_bf16, agg_ref, z_ref, seed_sem, *, n_pad, tile):
    t = pl.program_id(0)
    i = pl.program_id(1)
    k = pl.program_id(2)
    nk = pl.num_programs(2)
    read_off = (t % 2) * n_pad
    write_off = n_pad - read_off
    row = i * tile

    @pl.when((t == 0) & (i == 0) & (k == 0))
    def _():
        _seed_state(x0_hbm, x_f32, x_bf16, seed_sem, n_pad)

    @pl.when(k == 0)
    def _():
        agg_ref[...] = jnp.zeros_like(agg_ref)

    # agg += A[i, k] @ X_t[k-tile]  -- reads the bf16 state copy (no per-k cast).
    xk = x_bf16[pl.ds(pl.multiple_of(read_off + k * tile, 128), tile), :]
    agg_ref[...] += jnp.dot(a_ref[...], xk, preferred_element_type=jnp.float32)

    @pl.when(k == nk - 1)
    def _():
        xi_f32 = x_f32[pl.ds(pl.multiple_of(row, 128), tile), :]
        xi_bf16 = x_bf16[pl.ds(pl.multiple_of(read_off + row, 128), tile), :]
        x_new = _update_row_tile(agg_ref[...], xi_f32, xi_bf16,
                                 wcat_ref, b_ref, z_ref)
        x_f32[pl.ds(pl.multiple_of(row, 128), tile), :] = x_new
        x_bf16[pl.ds(pl.multiple_of(write_off + row, 128), tile), :] = (
            x_new.astype(jnp.bfloat16))

        @pl.when(t == NUM_ITERS - 1)
        def _():
            o_ref[pl.ds(pl.multiple_of(row, 128), tile), :] = x_new


# ---------------------------------------------------------------------------
# Host-side graph preprocessing (tiny, done in XLA).
# ---------------------------------------------------------------------------
def build_gcn_adjacency(edge_index, num_nodes):
    """Dense GCN-normalized adjacency with self loops: D^-1/2 (A + I) D^-1/2.
    NOTE: duplicate edges are double-counted; matches PyG for dedup'ed edge_index."""
    src, dst = edge_index[0], edge_index[1]
    adj = jnp.zeros((num_nodes, num_nodes), jnp.float32)
    adj = adj.at[dst, src].add(1.0)               # message j -> i
    adj = adj + jnp.eye(num_nodes, dtype=jnp.float32)
    deg = adj.sum(axis=1)
    dis = jnp.where(deg > 0, 1.0 / jnp.sqrt(deg), 0.0)
    return dis[:, None] * adj * dis[None, :]


def build_pool_matrix(batch, num_graphs, num_nodes):
    """P[g, i] = 1/count_g if batch[i] == g else 0 (global_mean_pool as matmul)."""
    onehot = (batch[None, :] == jnp.arange(num_graphs)[:, None]).astype(jnp.float32)
    counts = jnp.maximum(onehot.sum(axis=1, keepdims=True), 1.0)
    return onehot / counts


def _vmem_capacity_bytes():
    try:
        cap = getattr(pltpu.get_tpu_info(), "vmem_capacity_bytes", None)
        if cap:
            return int(cap)
    except Exception:
        pass
    return 64 * 1024 * 1024        # conservative default (v7x per-TensorCore)


def _plan(n, c, vmem_cap):
    """Choose padding, tile size and A residency from the actual VMEM capacity."""
    c_pad = _round_up(c, 128)
    n_pad = _round_up(n, 128)     # decoupled from the tile (no quadratic A inflation)

    def pick_tile(cands):
        for tc in cands:
            if tc <= n_pad and n_pad % tc == 0:
                return tc
        return 128

    budget = int(vmem_cap * 0.70)
    state = n_pad * c_pad * 4 + 2 * n_pad * c_pad * 2     # f32 state + bf16 ping-pong
    weights = 2 * (2 * c_pad * c_pad * 2) + 2 * c_pad * 4  # [Wg^T;Wa^T] + bias (x2 bufs)
    out_blk = 2 * n_pad * c_pad * 4                        # resident output block (x2)
    base = state + weights + out_blk

    r_tile = pick_tile((512, 256, 128))
    resident_extra = 2 * n_pad * n_pad * 2 + r_tile * 2 * c_pad * 2
    if base + resident_extra <= budget:
        return dict(resident=True, tile=r_tile, n_pad=n_pad, c_pad=c_pad,
                    vmem_bytes=base + resident_extra)

    s_tile = pick_tile((1024, 512, 256, 128))              # bigger tiles amortize per-step overhead
    stream_extra = (2 * s_tile * s_tile * 2 + s_tile * c_pad * 4
                    + s_tile * 2 * c_pad * 2)
    return dict(resident=False, tile=s_tile, n_pad=n_pad, c_pad=c_pad,
                vmem_bytes=base + stream_extra)


def anti_symmetric_dgn(x, edge_index, batch, params, num_graphs, num_classes):
    n, c = x.shape
    vmem_cap = _vmem_capacity_bytes()
    plan = _plan(n, c, vmem_cap)
    n_pad, c_pad, tile = plan["n_pad"], plan["c_pad"], plan["tile"]

    a_norm = build_gcn_adjacency(edge_index, n)
    pool = build_pool_matrix(batch, num_graphs, n)

    w, wg, b, wfc, bfc = (params["W"], params["Wg"], params["b"],
                          params["Wfc"], params["bfc"])
    wa_t = (w - w.T - GAMMA * jnp.eye(c, dtype=w.dtype)).T   # x @ antisym_W.T
    wg_t = wg.T

    # Padding invariants (keep if editing):
    #  * padded COLUMNS of A are zero -> padded node rows never leak into real rows;
    #  * padded CHANNELS have zero weights/bias -> they stay exactly zero;
    #  * padded node ROWS do pick up bias-driven values over iterations, but are
    #    sliced away ([:n]) before pooling.
    x_p = jnp.zeros((n_pad, c_pad), jnp.float32).at[:n, :c].set(x)
    a_p = (jnp.zeros((n_pad, n_pad), jnp.float32)
           .at[:n, :n].set(a_norm).astype(jnp.bfloat16))     # bf16 A (accepted accuracy)
    wg_t_p = jnp.zeros((c_pad, c_pad), jnp.float32).at[:c, :c].set(wg_t)
    wa_t_p = jnp.zeros((c_pad, c_pad), jnp.float32).at[:c, :c].set(wa_t)
    wcat = jnp.concatenate([wg_t_p, wa_t_p], axis=0).astype(jnp.bfloat16)  # [2C, C]
    b_p = jnp.zeros((1, c_pad), jnp.float32).at[0, :c].set(b)

    common_scratch = [
        pltpu.VMEM((n_pad, c_pad), jnp.float32),        # X state (f32, in-place update)
        pltpu.VMEM((2 * n_pad, c_pad), jnp.bfloat16),   # bf16 ping-pong copy (MXU reads)
    ]
    out_shape = jax.ShapeDtypeStruct((n_pad, c_pad), jnp.float32)

    if plan["resident"]:
        kernel = functools.partial(_kernel_resident, n_pad=n_pad, tile=tile)
        grid = (NUM_ITERS, n_pad // tile)
        in_specs = [
            pl.BlockSpec(memory_space=pl.ANY),                        # x0 (seeded via one DMA)
            pl.BlockSpec((n_pad, n_pad), lambda t, i: (0, 0)),        # A resident in VMEM
            pl.BlockSpec((2 * c_pad, c_pad), lambda t, i: (0, 0)),    # [Wg^T ; Wa^T]
            pl.BlockSpec((1, c_pad), lambda t, i: (0, 0)),            # bias
        ]
        out_specs = pl.BlockSpec((n_pad, c_pad), lambda t, i: (0, 0))
        scratch = common_scratch + [
            pltpu.VMEM((tile, 2 * c_pad), jnp.bfloat16),              # [A@X | X] staging
            pltpu.SemaphoreType.DMA,
        ]
        dims = ("arbitrary", "arbitrary")
    else:
        kernel = functools.partial(_kernel_streamed, n_pad=n_pad, tile=tile)
        grid = (NUM_ITERS, n_pad // tile, n_pad // tile)
        in_specs = [
            pl.BlockSpec(memory_space=pl.ANY),
            pl.BlockSpec((tile, tile), lambda t, i, k: (i, k)),       # streamed A tiles
            pl.BlockSpec((2 * c_pad, c_pad), lambda t, i, k: (0, 0)),
            pl.BlockSpec((1, c_pad), lambda t, i, k: (0, 0)),
        ]
        out_specs = pl.BlockSpec((n_pad, c_pad), lambda t, i, k: (0, 0))
        scratch = common_scratch + [
            pltpu.VMEM((tile, c_pad), jnp.float32),                   # A@X accumulator
            pltpu.VMEM((tile, 2 * c_pad), jnp.bfloat16),
            pltpu.SemaphoreType.DMA,
        ]
        dims = ("arbitrary", "arbitrary", "arbitrary")

    # Tight, hardware-clamped VMEM limit (estimate already counts double buffers).
    vmem_limit = min(int(vmem_cap),
                     max(32 * 1024 * 1024,
                         int(plan["vmem_bytes"] * 1.2) + (2 << 20)))

    x_final = pl.pallas_call(
        kernel,
        out_shape=out_shape,
        grid_spec=pltpu.PrefetchScalarGridSpec(
            num_scalar_prefetch=0,
            grid=grid,
            in_specs=in_specs,
            out_specs=out_specs,
            scratch_shapes=scratch,
        ),
        compiler_params=pltpu.CompilerParams(
            # TODO(synk): on v7x, shard the row-tile axis across both TensorCores
            # (core_map + VMEM_SHARED state + core_barrier).  With the state in
            # per-core scratch, all axes MUST stay "arbitrary" for correctness.
            dimension_semantics=dims,
            vmem_limit_bytes=vmem_limit,
        ),
    )(x_p, a_p, wcat, b_p)

    # global_mean_pool + final Linear are tiny (G=2, K=4) -> folded into XLA
    # (keeps the kernel output lane-dense, no masked partial stores).
    x_out = x_final[:n, :c]
    return (pool @ x_out) @ wfc.T + bfc


def reference_forward(x, edge_index, batch, params, num_graphs):
    """Pure-JAX f32 reference matching the PyTorch module."""
    n, c = x.shape
    a = build_gcn_adjacency(edge_index, n)
    pool = build_pool_matrix(batch, num_graphs, n)
    w, wg, b, wfc, bfc = (params["W"], params["Wg"], params["b"],
                          params["Wfc"], params["bfc"])
    wa = w - w.T - GAMMA * jnp.eye(c, dtype=w.dtype)
    h_x = x
    for _ in range(NUM_ITERS):
        h = a @ (h_x @ wg.T) + h_x @ wa.T + b
        h_x = h_x + EPS * jnp.tanh(h)
    return (pool @ h_x) @ wfc.T + bfc


if __name__ == "__main__":
    # Small deterministic problem: 2 graphs of 8 nodes each (ring graphs),
    # in_channels = 32, num_classes = 4.
    N, C, K, G = 16, 32, 4, 2

    key = jax.random.PRNGKey(0)
    kx, kw, kwg, kb, kwf, kbf = jax.random.split(key, 6)

    x = jax.random.normal(kx, (N, C), dtype=jnp.float32)

    # Ring edges within each graph, both directions (undirected, deduplicated).
    edges = []
    for g in range(G):
        base = g * 8
        for i in range(8):
            u, v = base + i, base + (i + 1) % 8
            edges.append((u, v))
            edges.append((v, u))
    edge_index = jnp.array(edges, dtype=jnp.int32).T       # [2, num_edges]
    batch = jnp.array([0] * 8 + [1] * 8, dtype=jnp.int32)  # node -> graph id

    params = {
        "W":   0.1 * jax.random.normal(kw,  (C, C), dtype=jnp.float32),
        "Wg":  0.1 * jax.random.normal(kwg, (C, C), dtype=jnp.float32),
        "b":   0.1 * jax.random.normal(kb,  (C,),   dtype=jnp.float32),
        "Wfc": 0.1 * jax.random.normal(kwf, (K, C), dtype=jnp.float32),
        "bfc": 0.1 * jax.random.normal(kbf, (K,),   dtype=jnp.float32),
    }

    out = anti_symmetric_dgn(x, edge_index, batch, params, G, K)
    jax.block_until_ready(out)
    assert out.shape == (G, K)

    # Loose check vs f32 reference (kernel uses bf16 MXU operands w/ f32 accum).
    ref = reference_forward(x, edge_index, batch, params, G)
    max_err = float(jnp.max(jnp.abs(out - ref)))
    assert max_err < 5e-2, f"max abs error {max_err}"

    print("KERNEL_OK")
</pallas_src>

<mosaic_0001>
module attributes {stable_mosaic.version = 11 : i64} {
  func.func @_kernel_resident(%arg0: i32, %arg1: i32, %arg2: memref<128x128xf32, #tpu.memory_space<any>>, %arg3: memref<128x128xbf16, #tpu.memory_space<vmem>>, %arg4: memref<256x128xbf16, #tpu.memory_space<vmem>>, %arg5: memref<1x128xf32, #tpu.memory_space<vmem>>, %arg6: memref<128x128xf32, #tpu.memory_space<vmem>>, %arg7: memref<128x128xf32, #tpu.memory_space<vmem>>, %arg8: memref<256x128xbf16, #tpu.memory_space<vmem>>, %arg9: memref<128x256xbf16, #tpu.memory_space<vmem>>, %arg10: memref<!tpu.dma_semaphore, #tpu.memory_space<semaphore_mem>>) attributes {dimension_semantics = [#tpu.dimension_semantics<arbitrary>, #tpu.dimension_semantics<arbitrary>], iteration_bounds = array<i64: 6, 1>, scalar_prefetch = 0 : i64, scratch_operands = 4 : i64, tpu.core_type = #tpu.core_type<tc>, window_params = [{}, {pipeline_mode = #tpu.pipeline_mode<synchronous>, transform_indices = @transform_1, window_bounds = array<i64: 128, 128>}, {pipeline_mode = #tpu.pipeline_mode<synchronous>, transform_indices = @transform_2, window_bounds = array<i64: 256, 128>}, {pipeline_mode = #tpu.pipeline_mode<synchronous>, transform_indices = @transform_3, window_bounds = array<i64: 1, 128>}, {pipeline_mode = #tpu.pipeline_mode<synchronous>, transform_indices = @transform_4, window_bounds = array<i64: 128, 128>}]} {
    %c2_i32 = arith.constant 2 : i32
    %c0_i32 = arith.constant 0 : i32
    %0 = arith.cmpi eq, %c2_i32, %c0_i32 : i32
    %c1_i32 = arith.constant 1 : i32
    %1 = arith.select %0, %c1_i32, %c2_i32 : i32
    %2 = arith.remsi %arg0, %1 : i32
    %c0_i32_0 = arith.constant 0 : i32
    %3 = arith.cmpi ne, %2, %c0_i32_0 : i32
    %c0_i32_1 = arith.constant 0 : i32
    %4 = arith.cmpi slt, %2, %c0_i32_1 : i32
    %c0_i32_2 = arith.constant 0 : i32
    %5 = arith.cmpi slt, %1, %c0_i32_2 : i32
    %6 = arith.xori %4, %5 : i1
    %7 = arith.andi %6, %3 : i1
    %8 = arith.addi %2, %1 : i32
    %9 = arith.select %7, %8, %2 : i32
    %c128_i32 = arith.constant 128 : i32
    %10 = arith.muli %9, %c128_i32 : i32
    %c128_i32_3 = arith.constant 128 : i32
    %11 = arith.subi %c128_i32_3, %10 : i32
    %c128_i32_4 = arith.constant 128 : i32
    %12 = arith.muli %arg1, %c128_i32_4 : i32
    %c0_i32_5 = arith.constant 0 : i32
    %13 = arith.cmpi eq, %arg0, %c0_i32_5 : i32
    %c0_i32_6 = arith.constant 0 : i32
    %14 = arith.cmpi eq, %arg1, %c0_i32_6 : i32
    %15 = arith.andi %13, %14 : i1
    %16 = arith.extui %15 : i1 to i32
    %c0_i32_7 = arith.constant 0 : i32
    %17 = arith.cmpi ne, %16, %c0_i32_7 : i32
    scf.if %17 {
      tpu.enqueue_dma source(%arg2 : memref<128x128xf32, #tpu.memory_space<any>>) target(%arg7 : memref<128x128xf32, #tpu.memory_space<vmem>>) target_semaphore(%arg10 : memref<!tpu.dma_semaphore, #tpu.memory_space<semaphore_mem>>)
      tpu.wait_dma2 semaphore(%arg10 : memref<!tpu.dma_semaphore, #tpu.memory_space<semaphore_mem>>) src(%arg2 : memref<128x128xf32, #tpu.memory_space<any>>) dst(%arg7 : memref<128x128xf32, #tpu.memory_space<vmem>>)
      %c0_25 = arith.constant 0 : index
      %c0_26 = arith.constant 0 : index
      %56 = vector.load %arg7[%c0_25, %c0_26] : memref<128x128xf32, #tpu.memory_space<vmem>>, vector<128x128xf32>
      %57 = arith.truncf %56 : vector<128x128xf32> to vector<128x128xbf16>
      %c0_27 = arith.constant 0 : index
      %c0_28 = arith.constant 0 : index
      %58 = vector.load %arg8[%c0_27, %c0_28] : memref<256x128xbf16, #tpu.memory_space<vmem>>, vector<128x128xbf16>
      tpu.vector_store %arg8[%c0_27, %c0_28], %57 {strides = array<i32>} : memref<256x128xbf16, #tpu.memory_space<vmem>>, vector<128x128xbf16>,
    } else {
    }
    %18 = tpu.assume_multiple %12, 128 : i32
    %19 = arith.index_cast %18 : i32 to index
    %c0 = arith.constant 0 : index
    %20 = vector.load %arg3[%19, %c0] : memref<128x128xbf16, #tpu.memory_space<vmem>>, vector<128x128xbf16>
    %21 = tpu.assume_multiple %10, 128 : i32
    %22 = arith.index_cast %21 : i32 to index
    %c0_8 = arith.constant 0 : index
    %23 = vector.load %arg8[%22, %c0_8] : memref<256x128xbf16, #tpu.memory_space<vmem>>, vector<128x128xbf16>
    %cst = arith.constant dense<0.000000e+00> : vector<128x128xf32>
    %24 = tpu.matmul %20, %23, %cst {dimension_numbers = #tpu.dot_dimension_numbers<[1], [0], [0], [1], [0, 0, 1, 1], [], []>} : vector<128x128xbf16>, vector<128x128xbf16>, vector<128x128xf32> -> vector<128x128xf32>
    %25 = tpu.assume_multiple %12, 128 : i32
    %26 = arith.index_cast %25 : i32 to index
    %c0_9 = arith.constant 0 : index
    %27 = vector.load %arg7[%26, %c0_9] : memref<128x128xf32, #tpu.memory_space<vmem>>, vector<128x128xf32>
    %28 = arith.addi %10, %12 : i32
    %29 = tpu.assume_multiple %28, 128 : i32
    %30 = arith.index_cast %29 : i32 to index
    %c0_10 = arith.constant 0 : index
    %31 = vector.load %arg8[%30, %c0_10] : memref<256x128xbf16, #tpu.memory_space<vmem>>, vector<128x128xbf16>
    %32 = arith.truncf %24 : vector<128x128xf32> to vector<128x128xbf16>
    %c0_11 = arith.constant 0 : index
    %c0_12 = arith.constant 0 : index
    %33 = vector.load %arg9[%c0_11, %c0_12] : memref<128x256xbf16, #tpu.memory_space<vmem>>, vector<128x128xbf16>
    tpu.vector_store %arg9[%c0_11, %c0_12], %32 {strides = array<i32>} : memref<128x256xbf16, #tpu.memory_space<vmem>>, vector<128x128xbf16>,
    %c0_13 = arith.constant 0 : index
    %c128 = arith.constant 128 : index
    %34 = vector.load %arg9[%c0_13, %c128] : memref<128x256xbf16, #tpu.memory_space<vmem>>, vector<128x128xbf16>
    tpu.vector_store %arg9[%c0_13, %c128], %31 {strides = array<i32>} : memref<128x256xbf16, #tpu.memory_space<vmem>>, vector<128x128xbf16>,
    %c0_14 = arith.constant 0 : index
    %c0_15 = arith.constant 0 : index
    %35 = vector.load %arg9[%c0_14, %c0_15] : memref<128x256xbf16, #tpu.memory_space<vmem>>, vector<128x256xbf16>
    %c0_16 = arith.constant 0 : index
    %c0_17 = arith.constant 0 : index
    %36 = vector.load %arg4[%c0_16, %c0_17] : memref<256x128xbf16, #tpu.memory_space<vmem>>, vector<256x128xbf16>
    %cst_18 = arith.constant dense<0.000000e+00> : vector<128x128xf32>
    %37 = tpu.matmul %35, %36, %cst_18 {dimension_numbers = #tpu.dot_dimension_numbers<[1], [0], [0], [1], [0, 0, 1, 1], [], []>} : vector<128x256xbf16>, vector<256x128xbf16>, vector<128x128xf32> -> vector<128x128xf32>
    %c0_19 = arith.constant 0 : index
    %c0_20 = arith.constant 0 : index
    %38 = vector.load %arg5[%c0_19, %c0_20] : memref<1x128xf32, #tpu.memory_space<vmem>>, vector<1x128xf32>
    %39 = vector.broadcast %38 : vector<1x128xf32> to vector<128x128xf32>
    %40 = arith.addf %37, %39 : vector<128x128xf32>
    %41 = math.tanh %40 : vector<128x128xf32>
    %cst_21 = arith.constant 1.000000e-01 : f32
    %42 = vector.broadcast %cst_21 : f32 to vector<128x128xf32>
    %43 = arith.mulf %42, %41 : vector<128x128xf32>
    %44 = arith.addf %27, %43 : vector<128x128xf32>
    %45 = tpu.assume_multiple %12, 128 : i32
    %46 = arith.index_cast %45 : i32 to index
    %c0_22 = arith.constant 0 : index
    %47 = vector.load %arg7[%46, %c0_22] : memref<128x128xf32, #tpu.memory_space<vmem>>, vector<128x128xf32>
    tpu.vector_store %arg7[%46, %c0_22], %44 {strides = array<i32>} : memref<128x128xf32, #tpu.memory_space<vmem>>, vector<128x128xf32>,
    %48 = arith.truncf %44 : vector<128x128xf32> to vector<128x128xbf16>
    %49 = arith.addi %11, %12 : i32
    %50 = tpu.assume_multiple %49, 128 : i32
    %51 = arith.index_cast %50 : i32 to index
    %c0_23 = arith.constant 0 : index
    %52 = vector.load %arg8[%51, %c0_23] : memref<256x128xbf16, #tpu.memory_space<vmem>>, vector<128x128xbf16>
    tpu.vector_store %arg8[%51, %c0_23], %48 {strides = array<i32>} : memref<256x128xbf16, #tpu.memory_space<vmem>>, vector<128x128xbf16>,
    %c5_i32 = arith.constant 5 : i32
    %53 = arith.cmpi eq, %arg0, %c5_i32 : i32
    %54 = arith.extui %53 : i1 to i32
    %c0_i32_24 = arith.constant 0 : i32
    %55 = arith.cmpi ne, %54, %c0_i32_24 : i32
    scf.if %55 {
      %56 = tpu.assume_multiple %12, 128 : i32
      %57 = arith.index_cast %56 : i32 to index
      %c0_25 = arith.constant 0 : index
      %58 = vector.load %arg6[%57, %c0_25] : memref<128x128xf32, #tpu.memory_space<vmem>>, vector<128x128xf32>
      tpu.vector_store %arg6[%57, %c0_25], %44 {strides = array<i32>} : memref<128x128xf32, #tpu.memory_space<vmem>>, vector<128x128xf32>,
    } else {
    }
    return
  }
  func.func @transform_1(%arg0: i32, %arg1: i32) -> (i32, i32) {
    %c0_i32 = arith.constant 0 : i32
    %c0_i32_0 = arith.constant 0 : i32
    %c0_i32_1 = arith.constant 0 : i32
    return %c0_i32, %c0_i32_0 : i32, i32
  }
  func.func @transform_2(%arg0: i32, %arg1: i32) -> (i32, i32) {
    %c0_i32 = arith.constant 0 : i32
    %c0_i32_0 = arith.constant 0 : i32
    %c0_i32_1 = arith.constant 0 : i32
    return %c0_i32, %c0_i32_0 : i32, i32
  }
  func.func @transform_3(%arg0: i32, %arg1: i32) -> (i32, i32) {
    %c0_i32 = arith.constant 0 : i32
    %c0_i32_0 = arith.constant 0 : i32
    %c0_i32_1 = arith.constant 0 : i32
    return %c0_i32, %c0_i32_0 : i32, i32
  }
  func.func @transform_4(%arg0: i32, %arg1: i32) -> (i32, i32) {
    %c0_i32 = arith.constant 0 : i32
    %c0_i32_0 = arith.constant 0 : i32
    %c0_i32_1 = arith.constant 0 : i32
    return %c0_i32, %c0_i32_0 : i32, i32
  }
}

</mosaic_0001>

<bundles_post_ra>
// kernel: tpu_custom_call.1
= control target key start
LH: loop header
LB: loop body
LE: loop exit
PB: predicated region body
PF: predicated region fallthrough
CT: control target
= control target key end

     0   :  { %9 = vsyncpa [#allocation7], 0  ;;  %s2176_s0 = inlined_call_operand.hbm [shape: f32[128,128], index: 0, kind: input, shape index: {}]   ;;  %s2177_s1 = inlined_call_operand.hbm [shape: bf16[128,128], index: 1, kind: input, shape index: {}]   ;;  %s2178_s2 = inlined_call_operand.hbm [shape: bf16[256,128], index: 2, kind: input, shape index: {}]   ;;  %s2179_s3 = inlined_call_operand.vmem [shape: f32[1,128], index: 3, kind: input, shape index: {}]   ;;  %s2180_s4 = inlined_call_operand.hbm [shape: f32[128,128], index: 4, kind: output, shape index: {}]  }
   0x1   :  { %10 = vsyncpa [#allocation10], 0 }
   0x2   :  { %11 = vsyncpa [#allocation8], 0  ;;  %s1963_s15 = smov 0   ;;  %s1965_s16 = smov 0  }
   0x3   :  { %s1967_s17 = smov 0  }
   0x4 LB: > { %s1262_s18 = sadd.s32 4294967295, %s1928_s17   ;;  %s29_s19 = sadd.s32 1, %s1924_s16  ;;  %s1928_s17 = sphi %s1967_s17, %s17_s17   ;;  %s1924_s16 = sphi %s1965_s16, %s2186_s16   ;;  %s1920_s15 = sphi %s1963_s15, %s2185_s15  }
   0x5   : > { %p31_p0 = scmp.ge.s32.totalorder %s29_s19, 6  ;;  %p1263_p1 = scmp.ge.s32.totalorder %s1928_s17, 1 }
   0x6   : > { %p118_p2 = scmp.lt.s32.totalorder %s1928_s17, 7  ;;  %p1990_p4 = scmp.eq.s32.totalorder %s1262_s18, 0 }
   0x7   : > { %s2188_s19 = smov (%p31_p0, %s29_s19), 0  ;;  %s1930_s22 = smov [#allocation6]  }
   0x8   : > { %p1984_p3 = pnand %p1263_p1, %p118_p2  ;;  %s130_s23 = sshll.u32 %s1930_s22, 4  ;;  %s131_s23 = int_to_ptr.vmem [resolvable:$true] %s130_s23 }
   0x9   : > { %s1931_s25 = smov [#allocation9]   ;;  %s1807_s27 = scalar_lea.vmem %s131_s23, 1024 }
   0xa   : > { %p1663_p5 = pneg %p1984_p3  ;;  %s143_s26 = sshll.u32 %s1931_s25, 4  ;;  %s144_s26 = int_to_ptr.vmem [resolvable:$true] %s143_s26 }
   0xb   : > { %p1808_p8 = scmp.ne.s32.totalorder %s131_s23, %s1807_s27  ;;  %p1815_p11 = scmp.lt.s32.totalorder %s131_s23, %s131_s23 }
   0xc   : > { %p1998_p6 = pnand %p1990_p4, %p1663_p5  ;;  %p1816_p12 = scmp.lt.s32.totalorder %s1807_s27, %s1807_s27 }
   0xe   : > { %p1798_p7 = pneg %p1998_p6  ;;  %p1817_p13 = por %p1816_p12, %p1815_p11 }
  0x10   : > { %p1810_p9 = pnand %p1808_p8, %p1798_p7 }
  0x12   : > { %p1811_p10 = pneg %p1810_p9 }
  0x14   : > { %p1818_p0 = pnand %p1817_p13, %p1811_p10 }
  0x16   : > { %1821 = shalt.err (!%p1818_p0)
}
  0x17   : > { %s1932_s28 = smov 64   ;;  %s1933_s29 = smov 4  }
  0x18   : > { %1666 = dma.hbm_to_vmem [thread:$0]  (!%p1998_p6), %s2177_s1, 1024, %s131_s23, [#allocation7], %s1932_s28, %s1932_s28, %s1933_s29  }
  0x19   : > { %s1833_s6 = scalar_lea.vmem %s144_s26, 2048  ;;  %p1841_p8 = scmp.lt.s32.totalorder %s144_s26, %s144_s26 }
  0x1a   : > { %p1834_p1 = scmp.ne.s32.totalorder %s144_s26, %s1833_s6  ;;  %p1842_p9 = scmp.lt.s32.totalorder %s1833_s6, %s1833_s6 }
  0x1c   : > { %p1836_p2 = pnand %p1834_p1, %p1798_p7  ;;  %p1843_p11 = por %p1842_p9, %p1841_p8 }
  0x1e   : > { %p1837_p5 = pneg %p1836_p2 }
  0x20   : > { %p1844_p10 = pnand %p1843_p11, %p1837_p5 }
  0x22   : > { %1847 = shalt.err (!%p1844_p10)
}
  0x23   : > { %1669 = dma.hbm_to_vmem [thread:$0]  (!%p1998_p6), %s2178_s2, 2048, %s144_s26, [#allocation10], %s1932_s28, %s1932_s28, %s1933_s29  }
  0x24   : > { %162 = sbr.rel (%p1984_p3) target bundleno = 614 (0x266), region = 32 }
  0x29   : > { %1905 = dma.done.wait (%p1990_p4), [#allocation7], 1024  }
  0x2a   : > { %1907 = vsyncadd (%p1990_p4), [#allocation7], 4294966272 }
  0x2b   : > { %1909 = dma.done.wait (%p1990_p4), [#allocation10], 2048  }
  0x2c   : > { %1911 = vsyncadd (%p1990_p4), [#allocation10], 4294965248  ;;  %p181_p6 = scmp.lt.s32.totalorder %s1920_s15, 0  ;;  %s182_s9 = ssub.s32 0, %s1920_s15 }
  0x2d   : > { %s1269_s10 = smin.u32 %s1920_s15, %s182_s9  ;;  %p196_p3 = scmp.eq.s32.totalorder %s1920_s15, 0 }
  0x2e   : > { %s184_s11 = sand.u32 1, %s1269_s10   ;;  %s1934_s21 = smov (%p196_p3), [#allocation2]  }
  0x2f   : > { %s185_s12 = ssub.s32 0, %s184_s11  ;;  %s209_s22 = sshll.u32 (%p196_p3), %s1934_s21, 4  ;;  %s210_s22 = int_to_ptr.vmem [resolvable:$true] %s209_s22 }
  0x30   : > { %s2190_s12 = smov (!%p181_p6, %s185_s12), %s184_s11  ;;  %s1856_s23 = scalar_lea.vmem (%p196_p3), %s210_s22, 2048 }
  0x31   : > { %p1271_p7 = scmp.lt.s32.totalorder %s2190_s12, 0  ;;  %s191_s13 = sadd.s32 2, %s2190_s12 }
  0x32   : > { %201 = sbr.rel (!%p196_p3) target bundleno = 70 (0x46), region = 44  ;;  %p1857_p4 = scmp.ne.s32.totalorder (%p196_p3), %s210_s22, %s1856_s23 }
  0x33   : > { %s2192_s13 = smov (!%p1271_p7, %s191_s13), %s2190_s12  ;;  %p1861_p12 = scmp.lt.s32.totalorder (%p196_p3), %s210_s22, %s210_s22 }
  0x34   : > { %s1272_s14 = sshll.u32 %s2192_s13, 7  ;;  %p1862_p13 = scmp.lt.s32.totalorder (%p196_p3), %s1856_s23, %s1856_s23 }
  0x35   : > { %s2039_s20 = ssub.s32 128, %s1272_s14 }
  0x36   : > { %p1863_p0 = por (%p196_p3), %p1862_p13, %p1861_p12 }
  0x38   : > { %p1864_p1 = pnand %p1863_p0, %p1857_p4 }
  0x3a   : > { %1867 = shalt.err (!%p1864_p1)  }
  0x3b   : > { %212 = dma.hbm_to_vmem [thread:$0]  %s2176_s0, 2048, %s210_s22, [#allocation5] }
  0x3c   : > { %1912 = dma.done.wait [#allocation5], 2048 }
  0x3d   : > { %1913 = vsyncadd [#allocation5], 4294965248  ;;  %v216_v0 = vld [vmem:[#allocation2] sm:$0xff]  ;;  %v217_v1 = vld [vmem:[#allocation2 + $0x8] sm:$0xff] }
  0x3e   : > { %v218_v2 = vld [vmem:[#allocation2 + $0x10] sm:$0xff]  ;;  %v1432_v3 = vpack.c.bf16 %v217_v1, %v216_v0  ;;  %v219_v4 = vld [vmem:[#allocation2 + $0x18] sm:$0xff]  ;;  %v220_v5 = vld [vmem:[#allocation2 + $0x20] sm:$0xff] }
  0x3f   : > { %v221_v6 = vld [vmem:[#allocation2 + $0x28] sm:$0xff]  ;;  %v1437_v7 = vpack.c.bf16 %v219_v4, %v218_v2  ;;  %v222_v9 = vld [vmem:[#allocation2 + $0x30] sm:$0xff]  ;;  %v223_v10 = vld [vmem:[#allocation2 + $0x38] sm:$0xff] }
  0x40   : > { %v1442_v8 = vpack.c.bf16 %v221_v6, %v220_v5  ;;  %v224_v11 = vld [vmem:[#allocation2 + $0x40] sm:$0xff]  ;;  %1433 = vst [vmem:[#allocation3] sm:$0xff] %v1432_v3   ;;  %v1447_v12 = vpack.c.bf16 %v223_v10, %v222_v9  ;;  %v225_v13 = vld [vmem:[#allocation2 + $0x48] sm:$0xff]  ;;  %v226_v14 = vld [vmem:[#allocation2 + $0x50] sm:$0xff] }
  0x41   : > { %v227_v15 = vld [vmem:[#allocation2 + $0x58] sm:$0xff]  ;;  %1509 = vst [vmem:[#allocation3 + $0x8] sm:$0xff] %v1437_v7   ;;  %v1452_v16 = vpack.c.bf16 %v225_v13, %v224_v11  ;;  %v228_v18 = vld [vmem:[#allocation2 + $0x60] sm:$0xff]  ;;  %v229_v19 = vld [vmem:[#allocation2 + $0x68] sm:$0xff] }
  0x42   : > { %1510 = vst [vmem:[#allocation3 + $0x10] sm:$0xff] %v1442_v8   ;;  %v1457_v17 = vpack.c.bf16 %v227_v15, %v226_v14  ;;  %v230_v20 = vld [vmem:[#allocation2 + $0x70] sm:$0xff]  ;;  %1511 = vst [vmem:[#allocation3 + $0x18] sm:$0xff] %v1447_v12   ;;  %v1462_v21 = vpack.c.bf16 %v229_v19, %v228_v18  ;;  %v231_v22 = vld [vmem:[#allocation2 + $0x78] sm:$0xff] }
  0x43   : > { %1512 = vst [vmem:[#allocation3 + $0x20] sm:$0xff] %v1452_v16   ;;  %v1467_v23 = vpack.c.bf16 %v231_v22, %v230_v20 }
  0x44   : > { %1513 = vst [vmem:[#allocation3 + $0x28] sm:$0xff] %v1457_v17   ;;  %1514 = vst [vmem:[#allocation3 + $0x30] sm:$0xff] %v1462_v21  }
  0x45   : > { %1515 = vst [vmem:[#allocation3 + $0x38] sm:$0xff] %v1467_v23  }
  0x46 PF: > { %s332_s26 = sshra.s32 %s1272_s14, 3  ;;  %v1716_v24 = vld [vmem:[#allocation6] sm:$0xff]   ;;  %v1724_v30 = vld [vmem:[#allocation9 + $0x78] sm:$0xff]   ;;  %v1726_v32 = vld [vmem:[#allocation9 + $0x70] sm:$0xff]   ;;  %s1136_s5 = sshra.s32 %s2039_s20, 3 }
  0x47   : > { %s1290_s27 = sshll.u32 %s332_s26, 2  ;;  %1619 = vmatprep.mubr.bf16.mxu0 %v1716_v24  ;;  %v1725_v31 = vld [vmem:[#allocation9 + $0x38] sm:$0xff]   ;;  %1635 = vmatprep.subr.bf16.mxu1 %v1724_v30  ;;  %v1727_v34 = vld [vmem:[#allocation9 + $0x30] sm:$0xff]   ;;  %v1728_v36 = vld [vmem:[#allocation9 + $0x68] sm:$0xff]   ;;  %s1373_s6 = sshll.u32 %s1136_s5, 2 }
  0x48   : > { %s2046_s28 = scalar_lea.vmem [#allocation3], %s1290_s27  ;;  %1643 = vmatpush3.bf16.msra.mxu1 %v1725_v31  ;;  %v1729_v37 = vld [vmem:[#allocation9 + $0x28] sm:$0xff]   ;;  %v1718_v40 = vld [vmem:[#allocation6 + $0x10] sm:$0xff]   ;;  %v1719_v41 = vld [vmem:[#allocation6 + $0x18] sm:$0xff]   ;;  %s2095_s7 = scalar_lea.vmem [#allocation3], %s1373_s6 }
  0x49   : > { %1636 = vmatprep.subr.bf16.mxu1 %v1726_v32  ;;  %v1717_v39 = vld [vmem:[#allocation6 + $0x8] sm:$0xff]   ;;  %v1720_v42 = vld [vmem:[#allocation6 + $0x20] sm:$0xff]   ;;  %v1722_v44 = vld [vmem:[#allocation6 + $0x30] sm:$0xff]   ;;  %p1374_p2 = scmp.ne.s32.totalorder %s1920_s15, 5 }
  0x4a   : > { %v1721_v43 = vld [vmem:[#allocation6 + $0x28] sm:$0xff]   ;;  %v1723_v45 = vld [vmem:[#allocation6 + $0x38] sm:$0xff]   ;;  %v1730_v46 = vld [vmem:[#allocation9 + $0x60] sm:$0xff]  }
  0x4b   : > { %v1731_v47 = vld [vmem:[#allocation9 + $0x20] sm:$0xff]   ;;  %v1732_v48 = vld [vmem:[#allocation9 + $0x58] sm:$0xff]   ;;  %v1734_v52 = vld [vmem:[#allocation9 + $0x50] sm:$0xff]  }
  0x4c   : > { %v1708_v25 = vld [vmem:[%s2046_s28 + $0x38] sm:$0xff]   ;;  %v1709_v26 = vld [vmem:[%s2046_s28 + $0x30] sm:$0xff]   ;;  %v1710_v27 = vld [vmem:[%s2046_s28 + $0x28] sm:$0xff]   ;;  %1644 = vmatpush3.bf16.msra.mxu1 %v1727_v34 }
  0x4d   : > { %1603 = vmatprep.subr.bf16.mxu0 %v1708_v25  ;;  %v1711_v28 = vld [vmem:[%s2046_s28 + $0x20] sm:$0xff]   ;;  %v1712_v29 = vld [vmem:[%s2046_s28 + $0x18] sm:$0xff]   ;;  %v1713_v33 = vld [vmem:[%s2046_s28 + $0x10] sm:$0xff]   ;;  %1637 = vmatprep.subr.bf16.mxu1 %v1728_v36 }
  0x4e   : > { %1604 = vmatpush3.bf16.msra.mxu0 %v1708_v25  ;;  %v1714_v35 = vld [vmem:[%s2046_s28 + $0x8] sm:$0xff]   ;;  %v1715_v38 = vld [vmem:[%s2046_s28] sm:$0xff]   ;;  %v1733_v49 = vld [vmem:[#allocation9 + $0x18] sm:$0xff]  }
  0x4f   : > { %1605 = vmatprep.subr.bf16.mxu0 %v1709_v26  ;;  %v569_v50 = vld [vmem:[%s2046_s28 + $0x8] sm:$0xf]  ;;  %v567_v51 = vld [vmem:[%s2046_s28] sm:$0xf]  ;;  %v1735_v53 = vld [vmem:[#allocation9 + $0x10] sm:$0xff]  }
  0x50   : > { %1645 = vmatpush3.bf16.msra.mxu1 %v1729_v37  ;;  %665 = vst [vmem:[#allocation4 + $0x14] sm:$0xf] %v569_v50  ;;  %663 = vst [vmem:[#allocation4 + $0x4] sm:$0xf] %v567_v51  ;;  %v570_v54 = vld [vmem:[%s2046_s28 + $0xc] sm:$0xf] }
  0x51   : > { %1638 = vmatprep.subr.bf16.mxu1 %v1730_v46  ;;  %666 = vst [vmem:[#allocation4 + $0x1c] sm:$0xf] %v570_v54  ;;  %v568_v55 = vld [vmem:[%s2046_s28 + $0x4] sm:$0xf]  ;;  %v1736_v56 = vld [vmem:[#allocation9 + $0x48] sm:$0xff]  }
  0x52   : > { %1606 = vmatpush3.bf16.msra.mxu0 %v1709_v26  ;;  %664 = vst [vmem:[#allocation4 + $0xc] sm:$0xf] %v568_v55  ;;  %v1737_v57 = vld [vmem:[#allocation9 + $0x8] sm:$0xff]   ;;  %v573_v58 = vld [vmem:[%s2046_s28 + $0x18] sm:$0xf]  ;;  %v1738_v60 = vld [vmem:[#allocation9 + $0x40] sm:$0xff]  }
  0x53   : > { %1607 = vmatprep.subr.bf16.mxu0 %v1710_v27  ;;  %669 = vst [vmem:[#allocation4 + $0x34] sm:$0xf] %v573_v58  ;;  %v571_v59 = vld [vmem:[%s2046_s28 + $0x10] sm:$0xf]  ;;  %v1739_v61 = vld [vmem:[#allocation9] sm:$0xff]  }
  0x54   : > { %1646 = vmatpush3.bf16.msra.mxu1 %v1731_v47  ;;  %667 = vst [vmem:[#allocation4 + $0x24] sm:$0xf] %v571_v59  ;;  %v574_v62 = vld [vmem:[%s2046_s28 + $0x1c] sm:$0xf]  ;;  %v572_v63 = vld [vmem:[%s2046_s28 + $0x14] sm:$0xf] }
  0x55   : > { %1639 = vmatprep.subr.bf16.mxu1 %v1732_v48  ;;  %670 = vst [vmem:[#allocation4 + $0x3c] sm:$0xf] %v574_v62  ;;  %668 = vst [vmem:[#allocation4 + $0x2c] sm:$0xf] %v572_v63  ;;  %v575_v0 = vld [vmem:[%s2046_s28 + $0x20] sm:$0xf] }
  0x56   : > { %1608 = vmatpush3.bf16.msra.mxu0 %v1710_v27  ;;  %v576_v1 = vld [vmem:[%s2046_s28 + $0x24] sm:$0xf]  ;;  %v577_v2 = vld [vmem:[%s2046_s28 + $0x28] sm:$0xf]  ;;  %671 = vst [vmem:[#allocation4 + $0x44] sm:$0xf] %v575_v0 }
  0x57   : > { %1609 = vmatprep.subr.bf16.mxu0 %v1711_v28  ;;  %672 = vst [vmem:[#allocation4 + $0x4c] sm:$0xf] %v576_v1  ;;  %v578_v3 = vld [vmem:[%s2046_s28 + $0x2c] sm:$0xf]  ;;  %673 = vst [vmem:[#allocation4 + $0x54] sm:$0xf] %v577_v2 }
  0x58   : > { %1647 = vmatpush3.bf16.msra.mxu1 %v1733_v49  ;;  %674 = vst [vmem:[#allocation4 + $0x5c] sm:$0xf] %v578_v3  ;;  %v579_v4 = vld [vmem:[%s2046_s28 + $0x30] sm:$0xf]  ;;  %v580_v5 = vld [vmem:[%s2046_s28 + $0x34] sm:$0xf] }
  0x59   : > { %1640 = vmatprep.subr.bf16.mxu1 %v1734_v52  ;;  %v581_v6 = vld [vmem:[%s2046_s28 + $0x38] sm:$0xf]  ;;  %675 = vst [vmem:[#allocation4 + $0x64] sm:$0xf] %v579_v4  ;;  %676 = vst [vmem:[#allocation4 + $0x6c] sm:$0xf] %v580_v5 }
  0x5a   : > { %1610 = vmatpush3.bf16.msra.mxu0 %v1711_v28  ;;  %v582_v7 = vld [vmem:[%s2046_s28 + $0x3c] sm:$0xf]  ;;  %677 = vst [vmem:[#allocation4 + $0x74] sm:$0xf] %v581_v6  ;;  %v1742_v26 = vld [vmem:[#allocation4 + $0x4] ss:$8 sps:$4 sm:$0xff]  }
  0x5b   : > { %1611 = vmatprep.subr.bf16.mxu0 %v1712_v29  ;;  %678 = vst [vmem:[#allocation4 + $0x7c] sm:$0xf] %v582_v7 }
  0x5c   : > { %1648 = vmatpush3.bf16.msra.mxu1 %v1735_v53 }
  0x5d   : > { %1641 = vmatprep.subr.bf16.mxu1 %v1736_v56 }
  0x5e   : > { %1612 = vmatpush3.bf16.msra.mxu0 %v1712_v29  ;;  %v1743_v29 = vld [vmem:[#allocation4 + $0x14] ss:$8 sps:$4 sm:$0xff]  }
  0x5f   : > { %1613 = vmatprep.subr.bf16.mxu0 %v1713_v33  ;;  %v1755_v50 = vld [vmem:[#allocation4 + $0x54] ss:$8 sps:$4 sm:$0xff]  }
  0x60   : > { %1649 = vmatpush3.bf16.msra.mxu1 %v1737_v57  ;;  %v1758_v51 = vld [vmem:[#allocation4 + $0x64] ss:$8 sps:$4 sm:$0xff]  }
  0x61   : > { %1642 = vmatprep.subr.bf16.mxu1 %v1738_v60 }
  0x62   : > { %1614 = vmatpush3.bf16.msra.mxu0 %v1713_v33  ;;  %v1761_v54 = vld [vmem:[#allocation4 + $0x74] ss:$8 sps:$4 sm:$0xff]  }
  0x63   : > { %1615 = vmatprep.subr.bf16.mxu0 %v1714_v35 }
  0x64   : > { %1650 = vmatpush3.bf16.msra.mxu1 %v1739_v61 }
  0x66   : > { %1616 = vmatpush3.bf16.msra.mxu0 %v1714_v35 }
  0x67   : > { %1617 = vmatprep.subr.bf16.mxu0 %v1715_v38 }
  0x6a   : > { %1618 = vmatpush3.bf16.msra.mxu0 %v1715_v38 }
  0x6b   : > { %1539 = vmatprep.subr.bf16.mxu0 %v1724_v30 }
  0x6d   : > { %1620 = vmatmul.mubr.bf16.vlgmr.msra.gmra.mxu0 %v1717_v39 }
  0x6e   : > { %1623 = vmatprep.mubr.bf16.mxu0 %v1718_v40  ;;  %1540 = vmatpush3.bf16.msra.mxu0 %v1725_v31  ;;  %v1749_v40 = vld [vmem:[#allocation4 + $0x34] ss:$8 sps:$4 sm:$0xff]  }
  0x6f   : > { %1541 = vmatprep.subr.bf16.mxu0 %v1726_v32 }
  0x72   : > { %1542 = vmatpush3.bf16.msra.mxu0 %v1727_v34 }
  0x73   : > { %1543 = vmatprep.subr.bf16.mxu0 %v1728_v36  ;;  %v1747_v36 = vld [vmem:[#allocation4 + $0x24] ss:$8 sps:$4 sm:$0xff]  }
  0x74   : > { %958 = vmatprep.mubr.bf16.mxu1 %v1747_v36 }
  0x75   : > { %1624 = vmatmul.mubr.bf16.gmra.mxu0 %v1719_v41 }
  0x76   : > { %1627 = vmatprep.mubr.bf16.mxu0 %v1720_v42  ;;  %1544 = vmatpush3.bf16.msra.mxu0 %v1729_v37 }
  0x77   : > { %1545 = vmatprep.subr.bf16.mxu0 %v1730_v46 }
  0x7a   : > { %1546 = vmatpush3.bf16.msra.mxu0 %v1731_v47  ;;  %v1752_v47 = vld [vmem:[#allocation4 + $0x44] ss:$8 sps:$4 sm:$0xff]  }
  0x7b   : > { %1547 = vmatprep.subr.bf16.mxu0 %v1732_v48 }
  0x7d   : > { %1628 = vmatmul.mubr.bf16.gmra.mxu0 %v1721_v43 }
  0x7e   : > { %1631 = vmatprep.mubr.bf16.mxu0 %v1722_v44  ;;  %1548 = vmatpush3.bf16.msra.mxu0 %v1733_v49 }
  0x7f   : > { %1549 = vmatprep.subr.bf16.mxu0 %v1734_v52 }
  0x82   : > { %1550 = vmatpush3.bf16.msra.mxu0 %v1735_v53 }
  0x83   : > { %1551 = vmatprep.subr.bf16.mxu0 %v1736_v56 }
  0x85   : > { %1632 = vmatmul.mubr.bf16.gmra.mxu0 %v1723_v45 }
  0x86   : > { %1552 = vmatpush3.bf16.msra.mxu0 %v1737_v57  ;;  %942 = vmatprep.mubr.bf16.mxu0 %v1742_v26  ;;  %v2075_v57 = vld [vmem:[%s2179_s3] ss:$0 sm:$0xff] }
  0x87   : > { %1553 = vmatprep.subr.bf16.mxu0 %v1738_v60 }
  0x8a   : > { %1554 = vmatpush3.bf16.msra.mxu0 %v1739_v61 }
 0x12d   : > { %v1621_v8 = vpop.f32.mrf.mxu0 }
 0x12e   : > { %v1399_v9 = vpack.c.bf16 %v1621_v8, %v1621_v8 }
 0x12f   : > { %v482_v10 = vpop.f32.mrf.mxu0 }
 0x130   : > { %649 = vst [vmem:[#allocation4 + $0x10] sm:$0xf] %v1399_v9  ;;  %v1397_v11 = vpack.c.bf16 %v482_v10, %v482_v10 }
 0x131   : > { %v1622_v12 = vpop.f32.mrf.mxu0 }
 0x132   : > { %647 = vst [vmem:[#allocation4] sm:$0xf] %v1397_v11  ;;  %v1400_v13 = vpack.c.bf16 %v1622_v12, %v1622_v12 }
 0x133   : > { %v485_v14 = vpop.f32.mrf.mxu0 }
 0x134   : > { %650 = vst [vmem:[#allocation4 + $0x18] sm:$0xf] %v1400_v13  ;;  %v1398_v15 = vpack.c.bf16 %v485_v14, %v485_v14 }
 0x135   : > { %v1625_v16 = vpop.f32.mrf.mxu0 }
 0x136   : > { %648 = vst [vmem:[#allocation4 + $0x8] sm:$0xf] %v1398_v15  ;;  %v1403_v17 = vpack.c.bf16 %v1625_v16, %v1625_v16 }
 0x137   : > { %v498_v18 = vpop.f32.mrf.mxu0 }
 0x138   : > { %653 = vst [vmem:[#allocation4 + $0x30] sm:$0xf] %v1403_v17  ;;  %v1401_v19 = vpack.c.bf16 %v498_v18, %v498_v18 }
 0x139   : > { %v1626_v20 = vpop.f32.mrf.mxu0 }
 0x13a   : > { %651 = vst [vmem:[#allocation4 + $0x20] sm:$0xf] %v1401_v19  ;;  %v1404_v21 = vpack.c.bf16 %v1626_v20, %v1626_v20 }
 0x13b   : > { %v501_v22 = vpop.f32.mrf.mxu0  ;;  %v1748_v38 = vld [vmem:[#allocation4 + $0x10] ss:$8 sps:$4 sm:$0xff]  }
 0x13c   : > { %654 = vst [vmem:[#allocation4 + $0x38] sm:$0xf] %v1404_v21  ;;  %v1402_v23 = vpack.c.bf16 %v501_v22, %v501_v22  ;;  %v546_v21 = vld [vmem:[#allocation2] sm:$0xff] }
 0x13d   : > { %v1629_v24 = vpop.f32.mrf.mxu0  ;;  %v1740_v25 = vld [vmem:[#allocation4] ss:$8 sps:$4 sm:$0xff]  }
 0x13e   : > { %652 = vst [vmem:[#allocation4 + $0x28] sm:$0xf] %v1402_v23  ;;  %v1407_v27 = vpack.c.bf16 %v1629_v24, %v1629_v24  ;;  %943 = vmatmul.mubr.bf16.vlgmr.msra.gmra.mxu0 %v1740_v25 }
 0x13f   : > { %v514_v28 = vpop.f32.mrf.mxu0  ;;  %950 = vmatprep.mubr.bf16.mxu0 %v1743_v29  ;;  %v547_v29 = vld [vmem:[#allocation2 + $0x8] sm:$0xff] }
 0x140   : > { %657 = vst [vmem:[#allocation4 + $0x50] sm:$0xf] %v1407_v27  ;;  %v1405_v30 = vpack.c.bf16 %v514_v28, %v514_v28 }
 0x141   : > { %v1630_v31 = vpop.f32.mrf.mxu0 }
 0x142   : > { %655 = vst [vmem:[#allocation4 + $0x40] sm:$0xf] %v1405_v30  ;;  %v1408_v32 = vpack.c.bf16 %v1630_v31, %v1630_v31 }
 0x143   : > { %v517_v33 = vpop.f32.mrf.mxu0  ;;  %v1751_v48 = vld [vmem:[#allocation4 + $0x30] ss:$8 sps:$4 sm:$0xff]  }
 0x144   : > { %658 = vst [vmem:[#allocation4 + $0x58] sm:$0xf] %v1408_v32  ;;  %v1406_v34 = vpack.c.bf16 %v517_v33, %v517_v33 }
 0x145   : > { %v1745_v35 = vld [vmem:[#allocation4 + $0x20] ss:$8 sps:$4 sm:$0xff]   ;;  %v1633_v37 = vpop.f32.mrf.mxu0 }
 0x146   : > { %656 = vst [vmem:[#allocation4 + $0x48] sm:$0xf] %v1406_v34  ;;  %v1411_v39 = vpack.c.bf16 %v1633_v37, %v1633_v37  ;;  %951 = vmatmul.mubr.bf16.gmra.mxu0 %v1748_v38  ;;  %959 = vmatmul.mubr.bf16.vlgmr.msra.gmra.mxu1 %v1745_v35  ;;  %v548_v37 = vld [vmem:[#allocation2 + $0x10] sm:$0xff] }
 0x147   : > { %v530_v41 = vpop.f32.mrf.mxu0  ;;  %966 = vmatprep.mubr.bf16.mxu1 %v1749_v40 }
 0x148   : > { %661 = vst [vmem:[#allocation4 + $0x70] sm:$0xf] %v1411_v39  ;;  %v1409_v42 = vpack.c.bf16 %v530_v41, %v530_v41 }
 0x149   : > { %v1634_v43 = vpop.f32.mrf.mxu0 }
 0x14a   : > { %659 = vst [vmem:[#allocation4 + $0x60] sm:$0xf] %v1409_v42  ;;  %v1412_v44 = vpack.c.bf16 %v1634_v43, %v1634_v43  ;;  %v550_v42 = vld [vmem:[#allocation2 + $0x20] sm:$0xff] }
 0x14b   : > { %v533_v45 = vpop.f32.mrf.mxu0  ;;  %v1757_v52 = vld [vmem:[#allocation4 + $0x50] ss:$8 sps:$4 sm:$0xff]  }
 0x14c   : > { %662 = vst [vmem:[#allocation4 + $0x78] sm:$0xf] %v1412_v44  ;;  %v1410_v46 = vpack.c.bf16 %v533_v45, %v533_v45 }
 0x14d   : > { %v1754_v49 = vld [vmem:[#allocation4 + $0x40] ss:$8 sps:$4 sm:$0xff]  }
 0x14e   : > { %660 = vst [vmem:[#allocation4 + $0x68] sm:$0xf] %v1410_v46  ;;  %967 = vmatmul.mubr.bf16.gmra.mxu1 %v1751_v48 }
 0x14f   : > { %974 = vmatprep.mubr.bf16.mxu1 %v1752_v47 }
 0x153   : > { %v1763_v55 = vld [vmem:[#allocation4 + $0x70] ss:$8 sps:$4 sm:$0xff]  }
 0x155   : > { %v1760_v53 = vld [vmem:[#allocation4 + $0x60] ss:$8 sps:$4 sm:$0xff]  }
 0x156   : > { %975 = vmatmul.mubr.bf16.gmra.mxu1 %v1754_v49 }
 0x157   : > { %982 = vmatprep.mubr.bf16.mxu1 %v1755_v50  ;;  %v549_v50 = vld [vmem:[#allocation2 + $0x18] sm:$0xff] }
 0x15e   : > { %983 = vmatmul.mubr.bf16.gmra.mxu1 %v1757_v52 }
 0x15f   : > { %990 = vmatprep.mubr.bf16.mxu1 %v1758_v51 }
 0x166   : > { %991 = vmatmul.mubr.bf16.gmra.mxu1 %v1760_v53 }
 0x167   : > { %998 = vmatprep.mubr.bf16.mxu1 %v1761_v54  ;;  %v551_v54 = vld [vmem:[#allocation2 + $0x28] sm:$0xff] }
 0x16e   : > { %999 = vmatmul.mubr.bf16.gmra.mxu1 %v1763_v55 }
 0x1fe   : > { %v1555_v56 = vpop.f32.mrf.mxu0 }
 0x200   : > { %v1556_v58 = vpop.f32.mrf.mxu0 }
 0x201   : > { %v1557_v59 = vadd.f32 %v1556_v58, %v1555_v56 }
 0x202   : > { %v1558_v60 = vpop.f32.mrf.mxu0 }
 0x203   : > { %v945_v61 = vadd.f32 %v1557_v59, %v2075_v57 }
 0x204   : > { %v1559_v62 = vpop.f32.mrf.mxu0 }
 0x205   : > { %1764 = vtanh.f32 %v945_v61  ;;  %v1560_v63 = vadd.f32 %v1559_v62, %v1558_v60 }
 0x206   : > { %v1561_v0 = vpop.f32.mrf.mxu0  ;;  %v1567_v1 = vpop.f32.mrf.mxu1 }
 0x207   : > { %v948_v2 = vadd.f32 %v1560_v63, %v2075_v57  ;;  %v552_v63 = vld [vmem:[#allocation2 + $0x30] sm:$0xff] }
 0x208   : > { %v1562_v3 = vpop.f32.mrf.mxu0  ;;  %v1568_v4 = vpop.f32.mrf.mxu1 }
 0x209   : > { %1766 = vtanh.f32 %v948_v2  ;;  %v1563_v5 = vadd.f32 %v1562_v3, %v1561_v0  ;;  %v1569_v6 = vadd.f32 %v1568_v4, %v1567_v1 }
 0x20a   : > { %v1564_v7 = vpop.f32.mrf.mxu0  ;;  %v1570_v8 = vpop.f32.mrf.mxu1 }
 0x20b   : > { %v953_v9 = vadd.f32 %v1563_v5, %v2075_v57  ;;  %v961_v10 = vadd.f32 %v1569_v6, %v2075_v57 }
 0x20c   : > { %v1565_v11 = vpop.f32.mrf.mxu0  ;;  %v1571_v12 = vpop.f32.mrf.mxu1 }
 0x20d   : > { %1768 = vtanh.f32 %v953_v9  ;;  %v1566_v13 = vadd.f32 %v1565_v11, %v1564_v7  ;;  %v1572_v14 = vadd.f32 %v1571_v12, %v1570_v8  ;;  %v553_v9 = vld [vmem:[#allocation2 + $0x38] sm:$0xff] }
 0x20e   : > { %1770 = vtanh.f32 %v961_v10  ;;  %v1573_v15 = vpop.f32.mrf.mxu1 }
 0x20f   : > { %v956_v16 = vadd.f32 %v1566_v13, %v2075_v57  ;;  %v964_v17 = vadd.f32 %v1572_v14, %v2075_v57 }
 0x210   : > { %v1574_v18 = vpop.f32.mrf.mxu1 }
 0x211   : > { %1772 = vtanh.f32 %v956_v16  ;;  %v1575_v19 = vadd.f32 %v1574_v18, %v1573_v15 }
 0x212   : > { %v1765_v20 = vpop.eup %1764  ;;  %1774 = vtanh.f32 %v964_v17  ;;  %v1576_v22 = vpop.f32.mrf.mxu1  ;;  %v554_v17 = vld [vmem:[#allocation2 + $0x40] sm:$0xff] }
 0x213   : > { %v1023_v23 = vmul.f32 0.1, %v1765_v20  ;;  %v969_v24 = vadd.f32 %v1575_v19, %v2075_v57 }
 0x214   : > { %v1577_v25 = vpop.f32.mrf.mxu1 }
 0x215   : > { %v2085_v26 = vadd.f32 %v1023_v23, %v546_v21  ;;  %1776 = vtanh.f32 %v969_v24  ;;  %v1578_v27 = vadd.f32 %v1577_v25, %v1576_v22 }
 0x216   : > { %v1767_v28 = vpop.eup %1766  ;;  %v1579_v30 = vpop.f32.mrf.mxu1 }
 0x217   : > { %1055 = vst [vmem:[#allocation2] sm:$0xff] %v2085_v26  ;;  %v1024_v31 = vmul.f32 0.1, %v1767_v28  ;;  %v972_v32 = vadd.f32 %v1578_v27, %v2075_v57  ;;  %v555_v27 = vld [vmem:[#allocation2 + $0x48] sm:$0xff] }
 0x218   : > { %v1580_v33 = vpop.f32.mrf.mxu1 }
 0x219   : > { %v2089_v34 = vadd.f32 %v1024_v31, %v547_v29  ;;  %1778 = vtanh.f32 %v972_v32  ;;  %v1581_v35 = vadd.f32 %v1580_v33, %v1579_v30 }
 0x21a   : > { %v1769_v36 = vpop.eup %1768  ;;  %v1582_v38 = vpop.f32.mrf.mxu1 }
 0x21b   : > { %v1771_v39 = vpop.eup %1770  ;;  %1056 = vst [vmem:[#allocation2 + $0x8] sm:$0xff] %v2089_v34  ;;  %v1472_v40 = vpack.c.bf16 %v2089_v34, %v2085_v26  ;;  %v1025_v41 = vmul.f32 0.1, %v1769_v36  ;;  %v977_v43 = vadd.f32 %v1581_v35, %v2075_v57  ;;  %v556_v36 = vld [vmem:[#allocation2 + $0x50] sm:$0xff] }
 0x21c   : > { %v1027_v44 = vmul.f32 0.1, %v1771_v39  ;;  %v1583_v45 = vpop.f32.mrf.mxu1 }
 0x21d   : > { %1473 = vst [vmem:[%s2095_s7] sm:$0xff] %v1472_v40   ;;  %v2098_v46 = vadd.f32 %v1025_v41, %v548_v37  ;;  %1780 = vtanh.f32 %v977_v43  ;;  %v1584_v47 = vadd.f32 %v1583_v45, %v1582_v38  ;;  %v557_v45 = vld [vmem:[#allocation2 + $0x58] sm:$0xff] }
 0x21e   : > { %v1773_v48 = vpop.eup %1772  ;;  %v2100_v49 = vadd.f32 %v1027_v44, %v550_v42  ;;  %v1585_v51 = vpop.f32.mrf.mxu1 }
 0x21f   : > { %v1775_v52 = vpop.eup %1774  ;;  %1057 = vst [vmem:[#allocation2 + $0x10] sm:$0xff] %v2098_v46  ;;  %v1026_v53 = vmul.f32 0.1, %v1773_v48  ;;  %v980_v55 = vadd.f32 %v1584_v47, %v2075_v57 }
 0x220   : > { %1059 = vst [vmem:[#allocation2 + $0x20] sm:$0xff] %v2100_v49  ;;  %v1028_v56 = vmul.f32 0.1, %v1775_v52  ;;  %v1586_v58 = vpop.f32.mrf.mxu1  ;;  %v558_v52 = vld [vmem:[#allocation2 + $0x60] sm:$0xff] }
 0x221   : > { %v2105_v59 = vadd.f32 %v1026_v53, %v549_v50  ;;  %1782 = vtanh.f32 %v980_v55  ;;  %v1587_v60 = vadd.f32 %v1586_v58, %v1585_v51  ;;  %v559_v58 = vld [vmem:[#allocation2 + $0x68] sm:$0xff] }
 0x222   : > { %v1777_v61 = vpop.eup %1776  ;;  %v2107_v62 = vadd.f32 %v1028_v56, %v551_v54  ;;  %v1588_v0 = vpop.f32.mrf.mxu1 }
 0x223   : > { %1058 = vst [vmem:[#allocation2 + $0x18] sm:$0xff] %v2105_v59  ;;  %v1477_v1 = vpack.c.bf16 %v2105_v59, %v2098_v46  ;;  %v1029_v2 = vmul.f32 0.1, %v1777_v61  ;;  %v985_v3 = vadd.f32 %v1587_v60, %v2075_v57 }
 0x224   : > { %1060 = vst [vmem:[#allocation2 + $0x28] sm:$0xff] %v2107_v62  ;;  %v1482_v4 = vpack.c.bf16 %v2107_v62, %v2100_v49  ;;  %v1589_v5 = vpop.f32.mrf.mxu1 }
 0x225   : > { %1516 = vst [vmem:[%s2095_s7 + $0x8] sm:$0xff] %v1477_v1   ;;  %v2117_v6 = vadd.f32 %v1029_v2, %v552_v63  ;;  %1784 = vtanh.f32 %v985_v3  ;;  %v1590_v7 = vadd.f32 %v1589_v5, %v1588_v0  ;;  %v560_v0 = vld [vmem:[#allocation2 + $0x70] sm:$0xff] }
 0x226   : > { %v1779_v8 = vpop.eup %1778  ;;  %1517 = vst [vmem:[%s2095_s7 + $0x10] sm:$0xff] %v1482_v4   ;;  %v1591_v10 = vpop.f32.mrf.mxu1  ;;  %v561_v4 = vld [vmem:[#allocation2 + $0x78] sm:$0xff] }
 0x227   : > { %1061 = vst [vmem:[#allocation2 + $0x30] sm:$0xff] %v2117_v6  ;;  %v1030_v11 = vmul.f32 0.1, %v1779_v8  ;;  %v988_v12 = vadd.f32 %v1590_v7, %v2075_v57 }
 0x228   : > { %v1592_v13 = vpop.f32.mrf.mxu1 }
 0x229   : > { %v2122_v14 = vadd.f32 %v1030_v11, %v553_v9  ;;  %1786 = vtanh.f32 %v988_v12  ;;  %v1593_v15 = vadd.f32 %v1592_v13, %v1591_v10 }
 0x22a   : > { %v1781_v16 = vpop.eup %1780  ;;  %v1594_v18 = vpop.f32.mrf.mxu1 }
 0x22b   : > { %1062 = vst [vmem:[#allocation2 + $0x38] sm:$0xff] %v2122_v14  ;;  %v1487_v19 = vpack.c.bf16 %v2122_v14, %v2117_v6  ;;  %v1031_v20 = vmul.f32 0.1, %v1781_v16  ;;  %v993_v21 = vadd.f32 %v1593_v15, %v2075_v57 }
 0x22c   : > { %v1595_v22 = vpop.f32.mrf.mxu1 }
 0x22d   : > { %1518 = vst [vmem:[%s2095_s7 + $0x18] sm:$0xff] %v1487_v19   ;;  %v2129_v23 = vadd.f32 %v1031_v20, %v554_v17  ;;  %1788 = vtanh.f32 %v993_v21  ;;  %v1596_v24 = vadd.f32 %v1595_v22, %v1594_v18 }
 0x22e   : > { %v1783_v25 = vpop.eup %1782  ;;  %v1597_v28 = vpop.f32.mrf.mxu1 }
 0x22f   : > { %1063 = vst [vmem:[#allocation2 + $0x40] sm:$0xff] %v2129_v23  ;;  %v1032_v29 = vmul.f32 0.1, %v1783_v25  ;;  %v996_v30 = vadd.f32 %v1596_v24, %v2075_v57 }
 0x230   : > { %v1598_v31 = vpop.f32.mrf.mxu1 }
 0x231   : > { %v1048_v32 = vadd.f32 %v1032_v29, %v555_v27  ;;  %1790 = vtanh.f32 %v996_v30  ;;  %v1599_v33 = vadd.f32 %v1598_v31, %v1597_v28 }
 0x232   : > { %v1785_v35 = vpop.eup %1784  ;;  %v1600_v37 = vpop.f32.mrf.mxu1 }
 0x233   : > { %1064 = vst [vmem:[#allocation2 + $0x48] sm:$0xff] %v1048_v32  ;;  %v1492_v38 = vpack.c.bf16 %v1048_v32, %v2129_v23  ;;  %v1033_v39 = vmul.f32 0.1, %v1785_v35  ;;  %v1001_v40 = vadd.f32 %v1599_v33, %v2075_v57 }
 0x234   : > { %v1601_v41 = vpop.f32.mrf.mxu1 }
 0x235   : > { %1519 = vst [vmem:[%s2095_s7 + $0x20] sm:$0xff] %v1492_v38   ;;  %v1049_v42 = vadd.f32 %v1033_v39, %v556_v36  ;;  %1792 = vtanh.f32 %v1001_v40  ;;  %v1602_v43 = vadd.f32 %v1601_v41, %v1600_v37 }
 0x236   : > { %v1787_v44 = vpop.eup %1786 }
 0x237   : > { %1065 = vst [vmem:[#allocation2 + $0x50] sm:$0xff] %v1049_v42  ;;  %v1034_v47 = vmul.f32 0.1, %v1787_v44  ;;  %v1004_v48 = vadd.f32 %v1602_v43, %v2075_v57 }
 0x239   : > { %v1050_v50 = vadd.f32 %v1034_v47, %v557_v45  ;;  %1794 = vtanh.f32 %v1004_v48 }
 0x23a   : > { %v1789_v51 = vpop.eup %1788 }
 0x23b   : > { %1066 = vst [vmem:[#allocation2 + $0x58] sm:$0xff] %v1050_v50  ;;  %v1497_v53 = vpack.c.bf16 %v1050_v50, %v1049_v42  ;;  %v1035_v54 = vmul.f32 0.1, %v1789_v51 }
 0x23d   : > { %1520 = vst [vmem:[%s2095_s7 + $0x28] sm:$0xff] %v1497_v53   ;;  %v1051_v55 = vadd.f32 %v1035_v54, %v558_v52 }
 0x23e   : > { %v1791_v56 = vpop.eup %1790 }
 0x23f   : > { %1067 = vst [vmem:[#allocation2 + $0x60] sm:$0xff] %v1051_v55  ;;  %v1036_v60 = vmul.f32 0.1, %v1791_v56 }
 0x241   : > { %v1052_v61 = vadd.f32 %v1036_v60, %v559_v58 }
 0x242   : > { %v1793_v63 = vpop.eup %1792 }
 0x243   : > { %1068 = vst [vmem:[#allocation2 + $0x68] sm:$0xff] %v1052_v61  ;;  %v1502_v57 = vpack.c.bf16 %v1052_v61, %v1051_v55  ;;  %v1037_v1 = vmul.f32 0.1, %v1793_v63 }
 0x245   : > { %1521 = vst [vmem:[%s2095_s7 + $0x30] sm:$0xff] %v1502_v57   ;;  %v1053_v2 = vadd.f32 %v1037_v1, %v560_v0 }
 0x246   : > { %v1795_v3 = vpop.eup %1794 }
 0x247   : > { %1069 = vst [vmem:[#allocation2 + $0x70] sm:$0xff] %v1053_v2  ;;  %v1038_v5 = vmul.f32 0.1, %v1795_v3 }
 0x249   : > { %v1054_v7 = vadd.f32 %v1038_v5, %v561_v4  ;;  %1159 = sbr.rel (%p1374_p2) target bundleno = 598 (0x256), region = 52 }
 0x24b   : > { %1070 = vst [vmem:[#allocation2 + $0x78] sm:$0xff] %v1054_v7  ;;  %v1507_v8 = vpack.c.bf16 %v1054_v7, %v1053_v2 }
 0x24d   : > { %1522 = vst [vmem:[%s2095_s7 + $0x38] sm:$0xff] %v1507_v8  }
 0x24e   : > { %1161 = vst [vmem:[#allocation11] sm:$0xff] %v2085_v26  ;;  %1162 = vst [vmem:[#allocation11 + $0x8] sm:$0xff] %v2089_v34 }
 0x24f   : > { %1163 = vst [vmem:[#allocation11 + $0x10] sm:$0xff] %v2098_v46  ;;  %1164 = vst [vmem:[#allocation11 + $0x18] sm:$0xff] %v2105_v59 }
 0x250   : > { %1165 = vst [vmem:[#allocation11 + $0x20] sm:$0xff] %v2100_v49  ;;  %1166 = vst [vmem:[#allocation11 + $0x28] sm:$0xff] %v2107_v62 }
 0x251   : > { %1167 = vst [vmem:[#allocation11 + $0x30] sm:$0xff] %v2117_v6  ;;  %1168 = vst [vmem:[#allocation11 + $0x38] sm:$0xff] %v2122_v14 }
 0x252   : > { %1169 = vst [vmem:[#allocation11 + $0x40] sm:$0xff] %v2129_v23  ;;  %1170 = vst [vmem:[#allocation11 + $0x48] sm:$0xff] %v1048_v32 }
 0x253   : > { %1171 = vst [vmem:[#allocation11 + $0x50] sm:$0xff] %v1049_v42  ;;  %1172 = vst [vmem:[#allocation11 + $0x58] sm:$0xff] %v1050_v50 }
 0x254   : > { %1173 = vst [vmem:[#allocation11 + $0x60] sm:$0xff] %v1051_v55  ;;  %1174 = vst [vmem:[#allocation11 + $0x68] sm:$0xff] %v1052_v61 }
 0x255   : > { %1175 = vst [vmem:[#allocation11 + $0x70] sm:$0xff] %v1053_v2  ;;  %1176 = vst [vmem:[#allocation11 + $0x78] sm:$0xff] %v1054_v7 }
 0x256 PF: > { %p2152_p5 = scmp.eq.s32.totalorder %s1262_s18, 5  ;;  %s1935_s8 = smov [#allocation11]  }
 0x257   : > { %s1183_s9 = sshll.u32 %s1935_s8, 4  ;;  %s1184_s9 = int_to_ptr.vmem [resolvable:$true] %s1183_s9 }
 0x258   : > { %s1868_s10 = scalar_lea.vmem %s1184_s9, 2048  ;;  %p1875_p10 = scmp.lt.s32.totalorder %s1184_s9, %s1184_s9 }
 0x259   : > { %p1869_p8 = scmp.ne.s32.totalorder %s1184_s9, %s1868_s10  ;;  %p1876_p6 = scmp.lt.s32.totalorder %s1868_s10, %s1868_s10 }
 0x25b   : > { %p1870_p9 = pnand %p1869_p8, %p2152_p5  ;;  %p1877_p3 = por %p1876_p6, %p1875_p10 }
 0x25d   : > { %p1871_p11 = pneg %p1870_p9 }
 0x25f   : > { %p1878_p7 = pnand %p1877_p3, %p1871_p11 }
 0x261   : > { %1881 = shalt.err (!%p1878_p7)
}
 0x262   : > { %s1936_s11 = smov 128   ;;  %s1937_s18 = smov 8  }
 0x263   : > { %1660 = dma.vmem_to_hbm [thread:$0]  (%p2152_p5), %s1184_s9, 2048, %s2180_s4, [#allocation8], %s1936_s11, %s1936_s11, %s1937_s18  }
 0x264   : > { %1915 = dma.done.wait (%p2152_p5), [#allocation8], 2048  }
 0x265   : > { %1917 = vsyncadd (%p2152_p5), [#allocation8], 4294965248 }
 0x266 PF: > { %s17_s17 = sadd.s32 1, %s1928_s17   ;;  %s2185_s15 = smov %s1924_s16 }
 0x267   : > { %p14_p4 = scmp.ge.s32.totalorder %s17_s17, 8   ;;  %s2186_s16 = smov %s2188_s19 }
 0x269   :  { %16 = sbr.rel (!%p14_p4) target bundleno = 4 (0x4), region = 83 }
 0x26e   :  { %1199 = vsyncpa [#allocation7], 1 }
 0x26f   :  { %1201 = vsyncpa [#allocation7 + $0x1], 1 }
 0x270   :  { %1202 = vsyncpa [#allocation10], 1 }
 0x271   :  { %1203 = vsyncpa [#allocation8], 1 }
 0x272   :  { %1205 = vsyncpa [#allocation8 + $0x1], 1 }
 0x273   :  { %1206 = vsyncmov [#allocation5] }
 0x276   :  { %s1207_s14 = vpop.sfrf %1206 }
 0x277   :  { %p1379_p12 = scmp.ne.s32.totalorder %s1207_s14, 0 }
 0x279   :  { %1211 = shalt.err (%p1379_p12)  }

</bundles_post_ra>
